<compile_context>
chip_gen: v6e
topology: v6e:2x2x1
jax: 0.10.0
libtpu: 0.0.40
codegen_flags: <defaults>
</compile_context>

<pallas_src>
import functools

import jax
import jax.numpy as jnp
from jax.experimental import pallas as pl
from jax.experimental.pallas import tpu as pltpu

_WIDTH = 1024       # lane-dense slab width (multiple of 128 -> unmasked vst)
_TILE_ROWS = 512    # 512 x 1024 f32 = 2 MiB per block; double-buffered in+out
                    # = 8 MiB, safely under the 16 MiB v5e scoped-VMEM default
                    # and well under v6e/v7x limits.


def _dropout_kernel(seed_ref, x_ref, o_ref, *, keep_prob, threshold):
    tile_rows, width = x_ref.shape
    tile_idx = pl.program_id(0)
    seed = seed_ref[0].astype(jnp.uint32)

    # Global linear element index of every element of this block (uint32,
    # wraps for huge tensors which is fine for hashing).
    rows = jax.lax.broadcasted_iota(jnp.uint32, (tile_rows, width), 0)
    cols = jax.lax.broadcasted_iota(jnp.uint32, (tile_rows, width), 1)
    base = tile_idx.astype(jnp.uint32) * jnp.uint32(tile_rows * width)
    gidx = base + rows * jnp.uint32(width) + cols

    # Counter-based hash: golden-ratio pre-mix + murmur3 fmix32 finalizer.
    z = gidx * jnp.uint32(0x9E3779B1) + seed
    z = z ^ (z >> 16)
    z = z * jnp.uint32(0x85EBCA6B)
    z = z ^ (z >> 13)
    z = z * jnp.uint32(0xC2B2AE35)
    z = z ^ (z >> 16)

    # Integer threshold compare: P(keep) = threshold / 2^32 ~= keep_prob.
    keep = z < jnp.uint32(threshold)

    # Scale in the input dtype (no forced f32 upcast: bf16 stays bf16 on
    # bf16-capable VPUs, f32 stays f32).
    scaled = x_ref[...] * (1.0 / keep_prob)
    o_ref[...] = jnp.where(keep, scaled, 0).astype(o_ref.dtype)


def dropout(x, p=0.5, seed=0, training=True):
    """Pallas TPU dropout. Identity when not training or p == 0."""
    if not training or p == 0.0:
        return x
    if p >= 1.0:
        return jnp.zeros_like(x)

    keep_prob = 1.0 - float(p)
    threshold = min(int(round(keep_prob * (1 << 32))), (1 << 32) - 1)

    orig_shape = x.shape
    dtype = x.dtype
    n = x.size

    # Flatten to a lane-dense (rows, 1024) slab. Pad only if the element
    # count is not a multiple of the slab width (no pad for typical shapes).
    pad = (-n) % _WIDTH
    flat = x.reshape(-1)
    if pad:
        flat = jnp.pad(flat, (0, pad))
    rows = flat.size // _WIDTH
    x2 = flat.reshape(rows, _WIDTH)

    tile_rows = min(_TILE_ROWS, rows)
    grid = (pl.cdiv(rows, tile_rows),)

    seed_arr = jnp.asarray([seed], dtype=jnp.int32)

    out2 = pl.pallas_call(
        functools.partial(
            _dropout_kernel, keep_prob=keep_prob, threshold=threshold
        ),
        out_shape=jax.ShapeDtypeStruct((rows, _WIDTH), dtype),
        grid=grid,
        in_specs=[
            pl.BlockSpec(memory_space=pltpu.MemorySpace.SMEM),   # seed scalar
            pl.BlockSpec((tile_rows, _WIDTH), lambda i: (i, 0)),  # data tile
        ],
        out_specs=pl.BlockSpec((tile_rows, _WIDTH), lambda i: (i, 0)),
        compiler_params=pltpu.CompilerParams(
            dimension_semantics=("parallel",),  # shard tiles across TCs (v7x)
        ),
    )(seed_arr, x2)

    out = out2.reshape(-1)
    if pad:
        out = out[:n]
    return out.reshape(orig_shape)


if __name__ == "__main__":
    key = jax.random.PRNGKey(0)
    x = jax.random.normal(key, (2, 4, 16, 16), dtype=jnp.float32)

    p = 0.5
    y = dropout(x, p=p, seed=1234, training=True)
    y = jax.block_until_ready(y)

    y_np = jax.device_get(y)
    x_np = jax.device_get(x)
    assert y_np.shape == x_np.shape and y_np.dtype == x_np.dtype

    # Kept elements are exactly x / (1 - p) (exact for p = 0.5); dropped
    # elements are exactly zero; drop fraction is roughly p.
    kept = y_np != 0.0
    assert jnp.allclose(y_np[kept], x_np[kept] / (1.0 - p), rtol=1e-6, atol=1e-6)
    drop_frac = 1.0 - kept.mean()
    assert 0.35 < drop_frac < 0.65, f"unreasonable drop fraction {drop_frac}"

    # Eval mode is identity.
    y_eval = jax.block_until_ready(dropout(x, p=p, seed=1234, training=False))
    assert jnp.array_equal(jax.device_get(y_eval), x_np)

    print("KERNEL_OK")
</pallas_src>

<mosaic_0001>
module attributes {stable_mosaic.version = 11 : i64} {
  func.func @_dropout_kernel(%arg0: i32, %arg1: memref<1xi32, #tpu.memory_space<smem>>, %arg2: memref<2x1024xf32, #tpu.memory_space<vmem>>, %arg3: memref<2x1024xf32, #tpu.memory_space<vmem>>) attributes {dimension_semantics = [#tpu.dimension_semantics<parallel>], iteration_bounds = array<i64: 1>, scalar_prefetch = 0 : i64, scratch_operands = 0 : i64, tpu.core_type = #tpu.core_type<tc>, window_params = [{transform_indices = @transform_0, window_bounds = array<i64: 1>}, {transform_indices = @transform_1, window_bounds = array<i64: 2, 1024>}, {transform_indices = @transform_2, window_bounds = array<i64: 2, 1024>}]} {
    %c0 = arith.constant 0 : index
    %0 = memref.load %arg1[%c0] : memref<1xi32, #tpu.memory_space<smem>>
    %1 = tpu.iota {dimensions = array<i32: 0>} : vector<2x1024xi32>
    %2 = tpu.iota {dimensions = array<i32: 1>} : vector<2x1024xi32>
    %c2048_i32 = arith.constant 2048 : i32
    %3 = arith.muli %arg0, %c2048_i32 : i32
    %c1024_i32 = arith.constant 1024 : i32
    %4 = vector.broadcast %c1024_i32 : i32 to vector<2x1024xi32>
    %5 = arith.muli %1, %4 : vector<2x1024xi32>
    %6 = vector.broadcast %3 : i32 to vector<2x1024xi32>
    %7 = arith.addi %6, %5 : vector<2x1024xi32>
    %8 = arith.addi %7, %2 : vector<2x1024xi32>
    %c-1640531535_i32 = arith.constant -1640531535 : i32
    %9 = vector.broadcast %c-1640531535_i32 : i32 to vector<2x1024xi32>
    %10 = arith.muli %8, %9 : vector<2x1024xi32>
    %11 = vector.broadcast %0 : i32 to vector<2x1024xi32>
    %12 = arith.addi %10, %11 : vector<2x1024xi32>
    %c16_i32 = arith.constant 16 : i32
    %13 = vector.broadcast %c16_i32 : i32 to vector<2x1024xi32>
    %14 = arith.shrui %12, %13 : vector<2x1024xi32>
    %15 = arith.xori %12, %14 : vector<2x1024xi32>
    %c-2048144789_i32 = arith.constant -2048144789 : i32
    %16 = vector.broadcast %c-2048144789_i32 : i32 to vector<2x1024xi32>
    %17 = arith.muli %15, %16 : vector<2x1024xi32>
    %c13_i32 = arith.constant 13 : i32
    %18 = vector.broadcast %c13_i32 : i32 to vector<2x1024xi32>
    %19 = arith.shrui %17, %18 : vector<2x1024xi32>
    %20 = arith.xori %17, %19 : vector<2x1024xi32>
    %c-1028477387_i32 = arith.constant -1028477387 : i32
    %21 = vector.broadcast %c-1028477387_i32 : i32 to vector<2x1024xi32>
    %22 = arith.muli %20, %21 : vector<2x1024xi32>
    %c16_i32_0 = arith.constant 16 : i32
    %23 = vector.broadcast %c16_i32_0 : i32 to vector<2x1024xi32>
    %24 = arith.shrui %22, %23 : vector<2x1024xi32>
    %25 = arith.xori %22, %24 : vector<2x1024xi32>
    %c-2147483648_i32 = arith.constant -2147483648 : i32
    %26 = vector.broadcast %c-2147483648_i32 : i32 to vector<2x1024xi32>
    %27 = arith.cmpi ult, %25, %26 : vector<2x1024xi32>
    %c0_1 = arith.constant 0 : index
    %c0_2 = arith.constant 0 : index
    %28 = vector.load %arg2[%c0_1, %c0_2] : memref<2x1024xf32, #tpu.memory_space<vmem>>, vector<2x1024xf32>
    %cst = arith.constant 2.000000e+00 : f32
    %29 = vector.broadcast %cst : f32 to vector<2x1024xf32>
    %30 = arith.mulf %28, %29 : vector<2x1024xf32>
    %c0_i32 = arith.constant 0 : i32
    %31 = arith.sitofp %c0_i32 : i32 to f32
    %32 = vector.broadcast %31 : f32 to vector<2x1024xf32>
    %33 = arith.select %27, %30, %32 : vector<2x1024xi1>, vector<2x1024xf32>
    %c0_3 = arith.constant 0 : index
    %c0_4 = arith.constant 0 : index
    %34 = vector.load %arg3[%c0_3, %c0_4] : memref<2x1024xf32, #tpu.memory_space<vmem>>, vector<2x1024xf32>
    tpu.vector_store %arg3[%c0_3, %c0_4], %33 {strides = array<i32>} : memref<2x1024xf32, #tpu.memory_space<vmem>>, vector<2x1024xf32>,
    return
  }
  func.func @transform_0(%arg0: i32) -> i32 {
    %c0_i32 = arith.constant 0 : i32
    %c0_i32_0 = arith.constant 0 : i32
    return %c0_i32 : i32
  }
  func.func @transform_1(%arg0: i32) -> (i32, i32) {
    %c0_i32 = arith.constant 0 : i32
    %c0_i32_0 = arith.constant 0 : i32
    return %arg0, %c0_i32 : i32, i32
  }
  func.func @transform_2(%arg0: i32) -> (i32, i32) {
    %c0_i32 = arith.constant 0 : i32
    %c0_i32_0 = arith.constant 0 : i32
    return %arg0, %c0_i32 : i32, i32
  }
}

</mosaic_0001>

<bundles_post_ra>
// kernel: tpu_custom_call.1
= control target key start
LH: loop header
LB: loop body
LE: loop exit
PB: predicated region body
PF: predicated region fallthrough
CT: control target
= control target key end

     0   :  { %8 = vsyncpa [#allocation4], 0  ;;  %s360_s0 = inlined_call_operand.<no memory space> [shape: s32[1], index: 0, kind: input, shape index: {}]   ;;  %s361_s1 = inlined_call_operand.hbm [shape: f32[2,1024], index: 1, kind: input, shape index: {}]   ;;  %s362_s2 = inlined_call_operand.hbm [shape: f32[2,1024], index: 2, kind: output, shape index: {}]  }
   0x1   :  { %9 = vsyncpa [#allocation5], 0  ;;  %s302_s9 = smov [#allocation3]  }
   0x2   :  { %s18_s10 = sshll.u32 %s302_s9, 4  ;;  %s19_s10 = int_to_ptr.vmem [resolvable:$true] %s18_s10 }
   0x3   :  { %s266_s11 = scalar_lea.vmem %s19_s10, 256  ;;  %p271_p1 = scmp.lt.s32.totalorder %s19_s10, %s19_s10 }
   0x4   :  { %p267_p0 = scmp.ne.s32.totalorder %s19_s10, %s266_s11  ;;  %p272_p2 = scmp.lt.s32.totalorder %s266_s11, %s266_s11 }
   0x6   :  { %p273_p3 = por %p272_p2, %p271_p1 }
   0x8   :  { %p274_p4 = pnand %p273_p3, %p267_p0 }
   0xa   :  { %277 = shalt.err (!%p274_p4)
}
   0xb   :  { %21 = dma.hbm_to_vmem [thread:$0]  %s361_s1, 256, %s19_s10, [#allocation4]  }
   0xc   :  { %298 = dma.done.wait [#allocation4], 256  }
   0xd   :  { %299 = vsyncadd [#allocation4], 4294967040  ;;  %v26_v0 = vlaneseq  ;;  %v303_v1 = vmov 1983009808   ;;  %v57_v18 = vstv %s360_s0  ;;  %v138_v19 = vld [vmem:[#allocation3] sm:$0xff]  ;;  %v139_v23 = vld [vmem:[#allocation3 + $0x8] sm:$0xff] }
   0xe   :  { %v146_v2 = vunpack.c.l.s4 %v303_v1  ;;  %v140_v26 = vmul.f32 2.0, %v138_v19  ;;  %v328_v31 = vmul.f32 2.0, %v139_v23  ;;  %s304_s0 = smov [#allocation6]  }
   0xf   :  { %v27_v3 = vshrl.u32 %v26_v0, 7  ;;  %v29_v4 = vand.u32 127, %v26_v0  ;;  %s246_s15 = sshll.u32 %s304_s0, 4  ;;  %s247_s15 = int_to_ptr.vmem [resolvable:$true] %s246_s15 }
  0x10   :  { %v147_v5 = vunpack.c.0.s8 %v146_v2  ;;  %v144_v34 = vcombine.high %v140_v26, %v140_v26  ;;  %s278_s16 = scalar_lea.vmem %s247_s15, 256  ;;  %p283_p6 = scmp.lt.s32.totalorder %s247_s15, %s247_s15 }
  0x11   :  { %v30_v6 = vadd.s32 128, %v29_v4  ;;  %v31_v7 = vadd.s32 256, %v29_v4  ;;  %v32_v8 = vadd.s32 384, %v29_v4  ;;  %v38_v9 = vmul.u32 1024, %v27_v3  ;;  %p279_p5 = scmp.ne.s32.totalorder %s247_s15, %s278_s16  ;;  %p284_p7 = scmp.lt.s32.totalorder %s278_s16, %s278_s16 }
  0x12   :  { %v323_v10 = vsub.s32 %v147_v5, %v27_v3  ;;  %v33_v11 = vadd.s32 512, %v29_v4  ;;  %v34_v12 = vadd.s32 640, %v29_v4  ;;  %v35_v13 = vadd.s32 768, %v29_v4 }
  0x13   :  { %v41_v14 = vadd.s32 %v38_v9, %v29_v4  ;;  %v42_v15 = vadd.s32 %v38_v9, %v30_v6  ;;  %v43_v16 = vadd.s32 %v38_v9, %v31_v7  ;;  %v44_v17 = vadd.s32 %v38_v9, %v32_v8  ;;  %p285_p8 = por %p284_p7, %p283_p6 }
  0x14   :  { %v36_v20 = vadd.s32 896, %v29_v4  ;;  %v45_v21 = vadd.s32 %v38_v9, %v33_v11  ;;  %v46_v22 = vadd.s32 %v38_v9, %v34_v12  ;;  %v47_v27 = vadd.s32 %v38_v9, %v35_v13 }
  0x15   :  { %v49_v24 = vmul.u32 2654435761, %v41_v14  ;;  %v50_v25 = vmul.u32 2654435761, %v42_v15  ;;  %v331_v35 = vrot.slane %v140_v26, %v323_v10  ;;  %v334_v42 = vrot.slane %v144_v34, %v323_v10  ;;  %p286_p9 = pnand %p285_p8, %p279_p5 }
  0x16   :  { %v51_v28 = vmul.u32 2654435761, %v43_v16  ;;  %v52_v29 = vmul.u32 2654435761, %v44_v17  ;;  %v48_v30 = vadd.s32 %v38_v9, %v36_v20  ;;  %v161_v20 = vcombine.high %v328_v31, %v328_v31 }
  0x17   :  { %v58_v32 = vadd.s32 %v57_v18, %v49_v24  ;;  %v59_v33 = vadd.s32 %v57_v18, %v50_v25  ;;  %v53_v38 = vmul.u32 2654435761, %v45_v21  ;;  %v54_v39 = vmul.u32 2654435761, %v46_v22 }
  0x18   :  { %v60_v36 = vadd.s32 %v57_v18, %v51_v28  ;;  %v61_v37 = vadd.s32 %v57_v18, %v52_v29  ;;  %v159_v43 = vcombine.high %v331_v35, %v331_v35  ;;  %v55_v46 = vmul.u32 2654435761, %v47_v27 }
  0x19   :  { %v66_v40 = vshrl.u32 %v58_v32, 16  ;;  %v67_v41 = vshrl.u32 %v59_v33, 16  ;;  %v56_v47 = vmul.u32 2654435761, %v48_v30  ;;  %v160_v50 = vcombine.high %v334_v42, %v334_v42 }
  0x1a   :  { %v68_v44 = vshrl.u32 %v60_v36, 16  ;;  %v69_v45 = vshrl.u32 %v61_v37, 16  ;;  %v62_v51 = vadd.s32 %v57_v18, %v53_v38  ;;  %v63_v54 = vadd.s32 %v57_v18, %v54_v39 }
  0x1b   :  { %v74_v48 = vxor.u32 %v66_v40, %v58_v32  ;;  %v75_v49 = vxor.u32 %v67_v41, %v59_v33  ;;  %v64_v55 = vadd.s32 %v57_v18, %v55_v46  ;;  %v65_v58 = vadd.s32 %v57_v18, %v56_v47 }
  0x1c   :  { %v76_v52 = vxor.u32 %v68_v44, %v60_v36  ;;  %v77_v53 = vxor.u32 %v69_v45, %v61_v37  ;;  %v70_v59 = vshrl.u32 %v62_v51, 16  ;;  %v71_v62 = vshrl.u32 %v63_v54, 16 }
  0x1d   :  { %v82_v56 = vmul.u32 2246822507, %v74_v48  ;;  %v83_v57 = vmul.u32 2246822507, %v75_v49  ;;  %v72_v63 = vshrl.u32 %v64_v55, 16  ;;  %v73_v2 = vshrl.u32 %v65_v58, 16 }
  0x1e   :  { %v84_v60 = vmul.u32 2246822507, %v76_v52  ;;  %v85_v61 = vmul.u32 2246822507, %v77_v53  ;;  %v78_v3 = vxor.u32 %v70_v59, %v62_v51  ;;  %v79_v6 = vxor.u32 %v71_v62, %v63_v54 }
  0x1f   :  { %v90_v0 = vshrl.u32 %v82_v56, 13  ;;  %v91_v1 = vshrl.u32 %v83_v57, 13  ;;  %v80_v7 = vxor.u32 %v72_v63, %v64_v55  ;;  %v81_v11 = vxor.u32 %v73_v2, %v65_v58 }
  0x20   :  { %v92_v4 = vshrl.u32 %v84_v60, 13  ;;  %v93_v5 = vshrl.u32 %v85_v61, 13  ;;  %v86_v12 = vmul.u32 2246822507, %v78_v3  ;;  %v87_v15 = vmul.u32 2246822507, %v79_v6 }
  0x21   :  { %v98_v8 = vxor.u32 %v90_v0, %v82_v56  ;;  %v99_v9 = vxor.u32 %v91_v1, %v83_v57  ;;  %v88_v16 = vmul.u32 2246822507, %v80_v7  ;;  %v89_v27 = vmul.u32 2246822507, %v81_v11 }
  0x22   :  { %v100_v13 = vxor.u32 %v92_v4, %v84_v60  ;;  %v101_v14 = vxor.u32 %v93_v5, %v85_v61  ;;  %v94_v19 = vshrl.u32 %v86_v12, 13  ;;  %v95_v23 = vshrl.u32 %v87_v15, 13 }
  0x23   :  { %v106_v17 = vmul.u32 3266489909, %v98_v8  ;;  %v107_v18 = vmul.u32 3266489909, %v99_v9  ;;  %v96_v24 = vshrl.u32 %v88_v16, 13  ;;  %v97_v37 = vshrl.u32 %v89_v27, 13 }
  0x24   :  { %v108_v21 = vmul.u32 3266489909, %v100_v13  ;;  %v109_v22 = vmul.u32 3266489909, %v101_v14  ;;  %v102_v28 = vxor.u32 %v94_v19, %v86_v12  ;;  %v103_v32 = vxor.u32 %v95_v23, %v87_v15 }
  0x25   :  { %v114_v25 = vshrl.u32 %v106_v17, 16  ;;  %v115_v26 = vshrl.u32 %v107_v18, 16  ;;  %v104_v33 = vxor.u32 %v96_v24, %v88_v16  ;;  %v105_v45 = vxor.u32 %v97_v37, %v89_v27 }
  0x26   :  { %v116_v29 = vshrl.u32 %v108_v21, 16  ;;  %v117_v30 = vshrl.u32 %v109_v22, 16  ;;  %v110_v38 = vmul.u32 3266489909, %v102_v28  ;;  %v111_v41 = vmul.u32 3266489909, %v103_v32 }
  0x27   :  { %v122_v34 = vxor.u32 %v114_v25, %v106_v17  ;;  %v123_v36 = vxor.u32 %v115_v26, %v107_v18  ;;  %v112_v44 = vmul.u32 3266489909, %v104_v33  ;;  %v113_v53 = vmul.u32 3266489909, %v105_v45 }
  0x28   :  { %v124_v39 = vxor.u32 %v116_v29, %v108_v21  ;;  %v125_v40 = vxor.u32 %v117_v30, %v109_v22  ;;  %v118_v46 = vshrl.u32 %v110_v38, 16  ;;  %v119_v55 = vshrl.u32 %v111_v41, 16 }
  0x29   :  { %vm130_vm0 = vcmp.lt.u32.totalorder %v122_v34, 2147483648  ;;  %vm131_vm1 = vcmp.lt.u32.totalorder %v123_v36, 2147483648  ;;  %v120_v56 = vshrl.u32 %v112_v44, 16  ;;  %v121_v59 = vshrl.u32 %v113_v53, 16 }
  0x2a   :  { %vm132_vm2 = vcmp.lt.u32.totalorder %v124_v39, 2147483648  ;;  %vm133_vm3 = vcmp.lt.u32.totalorder %v125_v40, 2147483648  ;;  %v186_v47 = vsel %vm130_vm0, %v331_v35, 0.0  ;;  %v187_v48 = vsel %vm131_vm1, %v159_v43, 0.0 }
  0x2b   :  { %v188_v49 = vsel %vm132_vm2, %v334_v42, 0.0  ;;  %v189_v51 = vsel %vm133_vm3, %v160_v50, 0.0  ;;  %v202_v52 = vcombine.low %v186_v47, %v187_v48  ;;  %v126_v57 = vxor.u32 %v118_v46, %v110_v38 }
  0x2c   :  { %v203_v54 = vcombine.low %v188_v49, %v189_v51  ;;  %v168_v60 = vrot.slane %v328_v31, %v323_v10  ;;  %v175_v35 = vrot.slane %v161_v20, %v323_v10  ;;  %v127_v61 = vxor.u32 %v119_v55, %v111_v41 }
  0x2d   :  { %v210_v58 = vrot.slane %v202_v52, %v323_v10  ;;  %v128_v62 = vxor.u32 %v120_v56, %v112_v44  ;;  %vm134_vm4 = vcmp.lt.u32.totalorder %v126_v57, 2147483648  ;;  %v129_v42 = vxor.u32 %v121_v59, %v113_v53 }
  0x2e   :  { %v217_v43 = vrot.slane %v203_v54, %v323_v10  ;;  %v176_v50 = vcombine.high %v168_v60, %v168_v60  ;;  %v177_v63 = vcombine.high %v175_v35, %v175_v35  ;;  %v190_v0 = vsel %vm134_vm4, %v168_v60, 0.0 }
  0x2f   :  { %vm135_vm5 = vcmp.lt.u32.totalorder %v127_v61, 2147483648  ;;  %vm136_vm6 = vcmp.lt.u32.totalorder %v128_v62, 2147483648  ;;  %vm137_vm7 = vcmp.lt.u32.totalorder %v129_v42, 2147483648 }
  0x30   :  { %v218_v1 = vcombine.low %v210_v58, %v217_v43  ;;  %v191_v2 = vsel %vm135_vm5, %v176_v50, 0.0  ;;  %v192_v3 = vsel %vm136_vm6, %v175_v35, 0.0  ;;  %v193_v4 = vsel %vm137_vm7, %v177_v63, 0.0 }
  0x31   :  { %v219_v31 = vcombine.low %v190_v0, %v191_v2  ;;  %v220_v5 = vcombine.low %v192_v3, %v193_v4 }
  0x32   :  { %238 = vst [vmem:[#allocation6] sm:$0xff] %v218_v1 }
  0x33   :  { %v227_v6 = vrot.slane %v219_v31, %v323_v10  ;;  %v234_v7 = vrot.slane %v220_v5, %v323_v10 }
  0x35   :  { %v235_v8 = vcombine.low %v227_v6, %v234_v7 }
  0x37   :  { %239 = vst [vmem:[#allocation6 + $0x8] sm:$0xff] %v235_v8 }
  0x38   :  { %289 = shalt.err (!%p286_p9)
}
  0x39   :  { %249 = dma.vmem_to_hbm [thread:$0]  %s247_s15, 256, %s362_s2, [#allocation5]  }
  0x3a   :  { %300 = dma.done.wait [#allocation5], 256  }
  0x3b   :  { %301 = vsyncadd [#allocation5], 4294967040 }
  0x3c   :  { %253 = vsyncpa [#allocation4], 1 }
  0x3d   :  { %254 = vsyncpa [#allocation5], 1 }

</bundles_post_ra>
